<compile_context>
chip_gen: v5e
topology: v5e:2x2
jax: 0.10.0
libtpu: 0.0.40
codegen_flags: <defaults>
</compile_context>

<pallas_src>
import jax
import jax.numpy as jnp
from jax.experimental import pallas as pl
from jax.experimental.pallas import tpu as pltpu

_BN_EPS = 1e-5


def _round_up(x, m):
    return (x + m - 1) // m * m


# ----------------------------------------------------------------------------
# Pallas kernel:  o = (W @ X) + bias      (BN scale pre-folded into W)
# ----------------------------------------------------------------------------

def _conv1x1_bn_kernel(x_ref, w_ref, b_ref, o_ref, acc_ref):
    k = pl.program_id(3)

    @pl.when(k == 0)
    def _():
        acc_ref[...] = jnp.zeros_like(acc_ref)

    acc_ref[...] += jnp.dot(w_ref[...], x_ref[...],
                            preferred_element_type=jnp.float32)

    @pl.when(k == pl.num_programs(3) - 1)
    def _():
        o_ref[...] = (acc_ref[...] + b_ref[...]).astype(o_ref.dtype)


def _conv1x1_bias(x, w, bias):
    """y[n] = w @ x[n] + bias[:, None]   for every batch sample n.

    x: (N, Cin, P) f32, w: (Cout, Cin) f32 (BN scale already folded in),
    bias: (Cout,) f32.  Returns (N, Cout, P) f32.
    """
    N, Cin, P = x.shape
    Cout, Cin2 = w.shape
    assert Cin == Cin2

    # --- M = Cout (output sublane dim) ---
    if Cout <= 256:
        tm = _round_up(Cout, 16)
        Mp = tm
    else:
        tm = 256
        Mp = _round_up(Cout, tm)

    # --- N = OH*OW (output lane dim): keep lane-dense (multiple of 128) ---
    Pp = _round_up(P, 128)
    tn = next(c for c in (512, 256, 128) if Pp % c == 0)

    # --- K = Cin (contraction): single full-extent block when it fits (no padding) ---
    if Cin <= 2048:
        tk = Cin
        Kp = Cin
    else:
        tk = 512
        Kp = _round_up(Cin, tk)

    xp = x
    if Kp != Cin or Pp != P:
        xp = jnp.pad(x, ((0, 0), (0, Kp - Cin), (0, Pp - P)))
    xp = xp.astype(jnp.bfloat16)

    wp = w
    if Mp != Cout or Kp != Cin:
        wp = jnp.pad(w, ((0, Mp - Cout), (0, Kp - Cin)))
    wp = wp.astype(jnp.bfloat16)

    bp = bias.astype(jnp.float32)
    if Mp != Cout:
        bp = jnp.pad(bp, (0, Mp - Cout))
    bp = bp.reshape(Mp, 1)

    grid = (N, Mp // tm, Pp // tn, Kp // tk)

    out = pl.pallas_call(
        _conv1x1_bn_kernel,
        out_shape=jax.ShapeDtypeStruct((N, Mp, Pp), jnp.float32),
        grid_spec=pltpu.PrefetchScalarGridSpec(
            num_scalar_prefetch=0,
            grid=grid,
            in_specs=[
                pl.BlockSpec((None, tk, tn), lambda n, i, j, k: (n, k, j)),  # X
                pl.BlockSpec((tm, tk), lambda n, i, j, k: (i, k)),           # W (scaled)
                pl.BlockSpec((tm, 1), lambda n, i, j, k: (i, 0)),            # bias
            ],
            out_specs=pl.BlockSpec((None, tm, tn), lambda n, i, j, k: (n, i, j)),
            scratch_shapes=[pltpu.VMEM((tm, tn), jnp.float32)],
        ),
        compiler_params=pltpu.CompilerParams(
            dimension_semantics=("parallel", "parallel", "parallel", "arbitrary")),
    )(xp, wp, bp)

    return out[:, :Cout, :P]


# ----------------------------------------------------------------------------
# downsample_layer forward: conv1x1(stride, bias=False) -> BatchNorm2d (eval, folded)
# ----------------------------------------------------------------------------

def downsample_layer_forward(params, x_nchw, stride):
    w = params["conv_w"]                              # (Cout, Cin, 1, 1), torch OIHW layout
    gamma, beta, mean, var = params["bn"]
    scale = gamma / jnp.sqrt(var + _BN_EPS)           # (Cout,)
    bias = beta - mean * scale                        # (Cout,)

    Cout, Cin, KH, KW = w.shape
    assert KH == 1 and KW == 1, "module default kernel_size=1"

    x = x_nchw.astype(jnp.float32)
    if stride > 1:
        x = x[:, :, ::stride, ::stride]               # strided subsample (layout only)
    N, _, OH, OW = x.shape
    P = OH * OW

    wm = w.reshape(Cout, Cin) * scale[:, None]        # fold BN scale into the weight
    xm = x.reshape(N, Cin, P)                         # contiguous -> free reshape

    y = _conv1x1_bias(xm, wm, bias)                   # fused conv + BN (Pallas)
    return y.reshape(N, Cout, OH, OW)                 # already NCHW


# ----------------------------------------------------------------------------
# Params + reference + self-test
# ----------------------------------------------------------------------------

def init_downsample_params(key, inplanes, planes):
    k1, k2, k3, k4, k5 = jax.random.split(key, 5)
    conv_w = jax.random.normal(k1, (planes, inplanes, 1, 1), jnp.float32) / jnp.sqrt(inplanes)
    gamma = jax.random.uniform(k2, (planes,), jnp.float32, 0.5, 1.5)
    beta = jax.random.normal(k3, (planes,), jnp.float32) * 0.1
    mean = jax.random.normal(k4, (planes,), jnp.float32) * 0.1
    var = jax.random.uniform(k5, (planes,), jnp.float32, 0.5, 1.5)
    return {"conv_w": conv_w, "bn": (gamma, beta, mean, var)}


def reference_forward(params, x_nchw, stride):
    w = params["conv_w"]                              # (Cout, Cin, 1, 1) OIHW
    gamma, beta, mean, var = params["bn"]
    scale = gamma / jnp.sqrt(var + _BN_EPS)
    bias = beta - mean * scale
    y = jax.lax.conv_general_dilated(
        x_nchw.astype(jnp.float32), w,
        window_strides=(stride, stride), padding="VALID",
        dimension_numbers=("NCHW", "OIHW", "NCHW"))
    return y * scale.reshape(1, -1, 1, 1) + bias.reshape(1, -1, 1, 1)


if __name__ == "__main__":
    key = jax.random.PRNGKey(0)
    k_param, k_input = jax.random.split(key)

    inplanes, planes, stride = 8, 16, 2
    params = init_downsample_params(k_param, inplanes, planes)
    x = jax.random.normal(k_input, (2, inplanes, 16, 16), jnp.float32)

    out = downsample_layer_forward(params, x, stride)
    out = jax.block_until_ready(out)

    assert out.shape == (2, planes, 8, 8), out.shape
    assert bool(jnp.all(jnp.isfinite(out)))

    ref = jax.block_until_ready(reference_forward(params, x, stride))
    assert bool(jnp.allclose(out, ref, rtol=5e-2, atol=5e-2)), \
        float(jnp.max(jnp.abs(out - ref)))

    print("KERNEL_OK")
</pallas_src>

<mosaic_0001>
module attributes {stable_mosaic.version = 11 : i64} {
  func.func @_conv1x1_bn_kernel(%arg0: i32, %arg1: i32, %arg2: i32, %arg3: i32, %arg4: memref<1x8x128xbf16, #tpu.memory_space<vmem>>, %arg5: memref<16x8xbf16, #tpu.memory_space<vmem>>, %arg6: memref<16x1xf32, #tpu.memory_space<vmem>>, %arg7: memref<1x16x128xf32, #tpu.memory_space<vmem>>, %arg8: memref<16x128xf32, #tpu.memory_space<vmem>>) attributes {dimension_semantics = [#tpu.dimension_semantics<parallel>, #tpu.dimension_semantics<parallel>, #tpu.dimension_semantics<parallel>, #tpu.dimension_semantics<arbitrary>], iteration_bounds = array<i64: 2, 1, 1, 1>, scalar_prefetch = 0 : i64, scratch_operands = 1 : i64, tpu.core_type = #tpu.core_type<tc>, window_params = [{transform_indices = @transform_0, window_bounds = array<i64: 1, 8, 128>}, {transform_indices = @transform_1, window_bounds = array<i64: 16, 8>}, {transform_indices = @transform_2, window_bounds = array<i64: 16, 1>}, {transform_indices = @transform_3, window_bounds = array<i64: 1, 16, 128>}]} {
    %c0_i32 = arith.constant 0 : i32
    %0 = arith.cmpi eq, %arg3, %c0_i32 : i32
    %1 = arith.extui %0 : i1 to i32
    %c0_i32_0 = arith.constant 0 : i32
    %2 = arith.cmpi ne, %1, %c0_i32_0 : i32
    scf.if %2 {
      %cst_11 = arith.constant 0.000000e+00 : f32
      %13 = vector.broadcast %cst_11 : f32 to vector<16x128xf32>
      %c0_12 = arith.constant 0 : index
      %c0_13 = arith.constant 0 : index
      %14 = vector.load %arg8[%c0_12, %c0_13] : memref<16x128xf32, #tpu.memory_space<vmem>>, vector<16x128xf32>
      tpu.vector_store %arg8[%c0_12, %c0_13], %13 {strides = array<i32>} : memref<16x128xf32, #tpu.memory_space<vmem>>, vector<16x128xf32>,
    } else {
    }
    %c0 = arith.constant 0 : index
    %c0_1 = arith.constant 0 : index
    %3 = vector.load %arg8[%c0, %c0_1] : memref<16x128xf32, #tpu.memory_space<vmem>>, vector<16x128xf32>
    %c0_2 = arith.constant 0 : index
    %c0_3 = arith.constant 0 : index
    %4 = vector.load %arg5[%c0_2, %c0_3] : memref<16x8xbf16, #tpu.memory_space<vmem>>, vector<16x8xbf16>
    %c0_4 = arith.constant 0 : index
    %c0_5 = arith.constant 0 : index
    %c0_6 = arith.constant 0 : index
    %5 = vector.load %arg4[%c0_4, %c0_5, %c0_6] : memref<1x8x128xbf16, #tpu.memory_space<vmem>>, vector<1x8x128xbf16>
    %6 = vector.shape_cast %5 : vector<1x8x128xbf16> to vector<8x128xbf16>
    %cst = arith.constant dense<0.000000e+00> : vector<16x128xf32>
    %7 = tpu.matmul %4, %6, %cst {dimension_numbers = #tpu.dot_dimension_numbers<[1], [0], [0], [1], [0, 0, 1, 1], [], []>} : vector<16x8xbf16>, vector<8x128xbf16>, vector<16x128xf32> -> vector<16x128xf32>
    %8 = arith.addf %3, %7 : vector<16x128xf32>
    %c0_7 = arith.constant 0 : index
    %c0_8 = arith.constant 0 : index
    %9 = vector.load %arg8[%c0_7, %c0_8] : memref<16x128xf32, #tpu.memory_space<vmem>>, vector<16x128xf32>
    tpu.vector_store %arg8[%c0_7, %c0_8], %8 {strides = array<i32>} : memref<16x128xf32, #tpu.memory_space<vmem>>, vector<16x128xf32>,
    %c0_i32_9 = arith.constant 0 : i32
    %10 = arith.cmpi eq, %arg3, %c0_i32_9 : i32
    %11 = arith.extui %10 : i1 to i32
    %c0_i32_10 = arith.constant 0 : i32
    %12 = arith.cmpi ne, %11, %c0_i32_10 : i32
    scf.if %12 {
      %c0_11 = arith.constant 0 : index
      %c0_12 = arith.constant 0 : index
      %13 = vector.load %arg8[%c0_11, %c0_12] : memref<16x128xf32, #tpu.memory_space<vmem>>, vector<16x128xf32>
      %c0_13 = arith.constant 0 : index
      %c0_14 = arith.constant 0 : index
      %14 = vector.load %arg6[%c0_13, %c0_14] : memref<16x1xf32, #tpu.memory_space<vmem>>, vector<16x1xf32>
      %15 = vector.broadcast %14 : vector<16x1xf32> to vector<16x128xf32>
      %16 = arith.addf %13, %15 : vector<16x128xf32>
      %c0_15 = arith.constant 0 : index
      %c0_16 = arith.constant 0 : index
      %c0_17 = arith.constant 0 : index
      %17 = vector.load %arg7[%c0_15, %c0_16, %c0_17] : memref<1x16x128xf32, #tpu.memory_space<vmem>>, vector<1x16x128xf32>
      %18 = vector.shape_cast %17 : vector<1x16x128xf32> to vector<16x128xf32>
      %19 = vector.shape_cast %16 : vector<16x128xf32> to vector<1x16x128xf32>
      tpu.vector_store %arg7[%c0_15, %c0_16, %c0_17], %19 {strides = array<i32>} : memref<1x16x128xf32, #tpu.memory_space<vmem>>, vector<1x16x128xf32>,
    } else {
    }
    return
  }
  func.func @transform_0(%arg0: i32, %arg1: i32, %arg2: i32, %arg3: i32) -> (i32, i32, i32) {
    %c0_i32 = arith.constant 0 : i32
    return %arg0, %arg3, %arg2 : i32, i32, i32
  }
  func.func @transform_1(%arg0: i32, %arg1: i32, %arg2: i32, %arg3: i32) -> (i32, i32) {
    %c0_i32 = arith.constant 0 : i32
    return %arg1, %arg3 : i32, i32
  }
  func.func @transform_2(%arg0: i32, %arg1: i32, %arg2: i32, %arg3: i32) -> (i32, i32) {
    %c0_i32 = arith.constant 0 : i32
    %c0_i32_0 = arith.constant 0 : i32
    return %arg1, %c0_i32 : i32, i32
  }
  func.func @transform_3(%arg0: i32, %arg1: i32, %arg2: i32, %arg3: i32) -> (i32, i32, i32) {
    %c0_i32 = arith.constant 0 : i32
    return %arg0, %arg1, %arg2 : i32, i32, i32
  }
}

</mosaic_0001>

<bundles_post_ra>
// kernel: tpu_custom_call.1
= control target key start
LH: loop header
LB: loop body
LE: loop exit
PB: predicated region body
PF: predicated region fallthrough
CT: control target
= control target key end

     0   :  { %8 = vsyncpa [#allocation4], 0  ;;  %s765_s0 = inlined_call_operand.vmem [shape: bf16[2,8,128], index: 0, kind: input, shape index: {}]   ;;  %s766_s1 = inlined_call_operand.vmem [shape: bf16[16,8], index: 1, kind: input, shape index: {}]   ;;  %s767_s2 = inlined_call_operand.vmem [shape: f32[16,1], index: 2, kind: input, shape index: {}]   ;;  %s768_s3 = inlined_call_operand.hbm [shape: f32[2,16,128], index: 3, kind: output, shape index: {}]  }
   0x1   :  { %10 = vsyncpa [#allocation4 + $0x1], 0  ;;  %s659_s12 = smov 0   ;;  %s661_s13 = smov 0  }
   0x2   :  { %s663_s14 = smov 0   ;;  %s665_s15 = smov 0  }
   0x3   :  { %s667_s16 = smov 0   ;;  %s669_s17 = smov 0  }
   0x4 LB: > { %s476_s18 = sadd.s32 4294967295, %s634_s17   ;;  %s477_s19 = sadd.s32 4294967294, %s634_s17   ;;  %s634_s17 = sphi %s669_s17, %s16_s17   ;;  %s630_s16 = sphi %s667_s16, %s775_s16   ;;  %s626_s15 = sphi %s665_s15, %s774_s15   ;;  %s622_s14 = sphi %s663_s14, %s773_s14   ;;  %s618_s13 = sphi %s661_s13, %s772_s13   ;;  %s614_s12 = sphi %s659_s12, %s771_s12  }
   0x5   : > { %s42_s20 = sadd.s32 1, %s630_s16  ;;  %s137_s21 = sadd.s32 1, %s622_s14 }
   0x6   : > { %p44_p0 = scmp.ge.s32.totalorder %s42_s20, 2  ;;  %p147_p1 = scmp.ne.s32.totalorder %s622_s14, %s618_s13 }
   0x7   : > { %p148_p2 = scmp.eq.s32.totalorder %s476_s18, 1  ;;  %p153_p3 = scmp.ne.s32.totalorder %s618_s13, %s614_s12 }
   0x8   : > { %s777_s20 = smov (%p44_p0, %s42_s20), 0  ;;  %p154_p5 = scmp.eq.s32.totalorder %s477_s19, 1 }
   0x9   : > { %p699_p4 = por %p148_p2, %p147_p1  ;;  %s130_s23 = ssub.s32 %s630_s16, %s777_s20 }
   0xa   : > { %p482_p6 = scmp.ge.s32.totalorder %s634_s17, 1  ;;  %p135_p7 = scmp.eq.s32.totalorder %s130_s23, 0 }
   0xb   : > { %p706_p8 = por %p154_p5, %p153_p3  ;;  %p206_p9 = scmp.lt.s32.totalorder %s634_s17, 3 }
   0xc   : > { %s712_s25 = scalar_select %p135_p7, %s622_s14, %s137_s21  }
   0xd   : > { %p207_p10 = pnand %p482_p6, %p206_p9 }
   0xe   : > { %p248_p11 = scmp.lt.s32.totalorder (!%p207_p10), %s626_s15, 1  ;;  %s245_s10 = sand.u32 (!%p207_p10), 1, %s618_s13  }
   0xf   : > { %210 = sbr.rel (%p207_p10) target bundleno = 169 (0xa9), region = 32  ;;  %s483_s11 = sshll.u32 (!%p207_p10), %s245_s10, 4 }
  0x10   : > { %s496_s18 = sshll.u32 (!%p207_p10), %s626_s15, 4  ;;  %s247_s26 = scalar_lea.vmem (!%p207_p10), [#allocation3], %s483_s11 }
  0x11   : > { %s353_s23 = scalar_lea.hbm (!%p207_p10), %s768_s3, %s496_s18  ;;  %s354_s27 = sshll.u32 (!%p207_p10), %s247_s26, 4  ;;  %s355_s27 = int_to_ptr.vmem [resolvable:$true] %s354_s27 }
  0x12   : > { %s576_s6 = scalar_lea.hbm (!%p207_p10), %s768_s3, 32 }
  0x14   : > { %v322_v0 = vld [vmem:[%s767_s2] sm:$0xff]  ;;  %v636_v1 = vmov 0   ;;  %s249_s28 = scalar_select %p248_p11, %s626_s15, 1  ;;  %vm295_vm0 = vcmask 1043456   ;;  %v323_v5 = vld [vmem:[%s767_s2 + $0x8] sm:$0xff]  ;;  %vm291_vm1 = vcmask 64512  }
  0x15   : > { %555 = vset.pattern.permute.xlu0 %v636_v1  ;;  %v495_v4 = vld [vmem:[%s766_s1] sm:$0xff] }
  0x16   : > { %326 = vperm.xlu0 %555, %v322_v0   ;;  %s484_s29 = sshll.u32 %s249_s28, 2  ;;  %s356_s28 = sshll.u32 %s353_s23, 4  ;;  %s357_s28 = int_to_ptr.hbm [resolvable:$true] %s356_s28 }
  0x17   : > { %s257_s5 = scalar_lea.vmem %s765_s0, %s484_s29  ;;  %s339_s29 = scalar_lea.sflag [#allocation4], %s245_s10 }
  0x18   : > { %v285_v2 = vld [vmem:[%s257_s5] sm:$0xf]  ;;  %s570_s30 = sshra.s32 %s357_s28, 4  ;;  %s571_s30 = int_to_ptr.hbm [resolvable:$true] %s570_s30 }
  0x19   : > { %v297_v3 = vsel %vm295_vm0, %v285_v2, 0  ;;  %s572_s15 = scalar_lea.hbm %s571_s30, 16  ;;  %p577_p1 = scmp.lt.s32.totalorder %s571_s30, %s768_s3 }
  0x1a   : > { %306 = vmatpush.bf16.msra.mxu0 %v297_v3  ;;  %p573_p12 = scmp.ne.s32.totalorder %s571_s30, %s572_s15  ;;  %p578_p2 = scmp.lt.s32.totalorder %s576_s6, %s572_s15 }
  0x1c   : > { %p574_p13 = pnand %p573_p12, %p699_p4  ;;  %p579_p3 = por %p578_p2, %p577_p1 }
  0x1d   : > { %489 = vmatmul.msk.bf16.vlgmr.msra.gmra.mxu0 %vm291_vm1, %v495_v4 }
  0x1e   : > { %331 = vperm.xlu0 %555, %v323_v5   ;;  %p575_p0 = pneg %p574_p13 }
  0x20   : > { %p580_p5 = pnand %p579_p3, %p575_p0 }
  0x88   : > { %v327_v6 = vpop.permute.xlu0 %326 }
  0x90   : > { %v332_v9 = vpop.permute.xlu0 %331 }
  0x9a   : > { %v308_v7 = vpop.f32.mrf.mxu0 }
  0x9b   : > { %v334_v8 = vadd.f32 %v327_v6, %v308_v7 }
  0x9d   : > { %336 = vst [vmem:[%s247_s26] sm:$0xff] %v334_v8 }
  0xa2   : > { %v310_v10 = vpop.f32.mrf.mxu0 }
  0xa3   : > { %v335_v11 = vadd.f32 %v332_v9, %v310_v10 }
  0xa5   : > { %337 = vst [vmem:[%s247_s26 + $0x8] sm:$0xff] %v335_v11 }
  0xa6   : > { %583 = shalt.err (!%p580_p5)
}
  0xa7   : > { %s637_s9 = smov 128   ;;  %s638_s10 = smov 8  }
  0xa8   : > { %497 = dma.vmem_to_hbm [thread:$0]  (%p699_p4), %s355_s27, 256, %s357_s28, %s339_s29, %s637_s9, %s637_s9, %s638_s10  }
  0xa9 PF: > { %p503_p6 = scmp.ge.s32.totalorder %s634_s17, 2  ;;  %s371_s11 = sand.u32 1, %s614_s12  }
  0xaa   : > { %s372_s18 = scalar_lea.sflag [#allocation4], %s371_s11 }
  0xab   : > { %p500_p7 = pnand %p503_p6, %p706_p8 }
  0xad   : > { %p501_p9 = pneg %p500_p7 }
  0xaf   : > { %609 = dma.done.wait (%p501_p9), %s372_s18, 256  }
  0xb0   : > { %611 = vsyncadd (%p501_p9), %s372_s18, 4294967040  ;;  %s16_s17 = sadd.s32 1, %s634_s17   ;;  %s771_s12 = smov %s618_s13 }
  0xb1   : > { %p13_p10 = scmp.ge.s32.totalorder %s16_s17, 4   ;;  %s772_s13 = smov %s622_s14 }
  0xb2   : > { %s773_s14 = smov %s712_s25  ;;  %s774_s15 = smov %s630_s16 }
  0xb3   : > { %s775_s16 = smov %s777_s20  ;;  %15 = sbr.rel (!%p13_p10) target bundleno = 4 (0x4), region = 81 }
  0xb8   :  { %378 = vsyncpa [#allocation4], 1 }
  0xb9   :  { %380 = vsyncpa [#allocation4 + $0x1], 1 }

</bundles_post_ra>
